<compile_context>
chip_gen: v5e
topology: v5e:2x2
jax: 0.10.0
libtpu: 0.0.40
codegen_flags: <defaults>
</compile_context>

<pallas_src>
import functools
import math

import jax
import jax.numpy as jnp
from jax.experimental import pallas as pl
from jax.experimental.pallas import tpu as pltpu

LOG_STD_MAX = 2.0
LOG_STD_MIN = -5.0


def _round_up(n, m):
    return ((n + m - 1) // m) * m


def _cdiv(a, b):
    return (a + b - 1) // b


# ---------------------------------------------------------------------------
# Kernel
# ---------------------------------------------------------------------------
def actor_kernel(x_ref, w1_ref, b1_ref, w2_ref, b2_ref, wh_ref, bh_ref,
                 out_ref, *, a_pad):
    """One batch tile: two hidden layers + fused (mean || log_std) head.

    Output columns [0, a_pad)       -> mean (identity)
    Output columns [a_pad, 2*a_pad) -> log_std (tanh + affine clamp)
    """
    w_dtype = w1_ref.dtype
    x = x_ref[...]

    h1 = jnp.dot(x, w1_ref[...], preferred_element_type=jnp.float32) + b1_ref[...]
    h1 = jnp.maximum(h1, 0.0).astype(w_dtype)

    h2 = jnp.dot(h1, w2_ref[...], preferred_element_type=jnp.float32) + b2_ref[...]
    h2 = jnp.maximum(h2, 0.0).astype(w_dtype)

    # Single fused head matmul: (TB, H_pad) @ (H_pad, 2*A_pad) -> f32
    y = jnp.dot(h2, wh_ref[...], preferred_element_type=jnp.float32) + bh_ref[...]

    # Mean half: raw.  Both slices are 128-lane aligned -> unmasked stores.
    out_ref[:, :a_pad] = y[:, :a_pad]
    # log_std half only: tanh (EUP) + affine clamp.
    ls = jnp.tanh(y[:, a_pad:])
    out_ref[:, a_pad:] = LOG_STD_MIN + 0.5 * (LOG_STD_MAX - LOG_STD_MIN) * (ls + 1.0)


# ---------------------------------------------------------------------------
# Wrapper
# ---------------------------------------------------------------------------
def actor_forward(x, params, *, block_b=512):
    """x: (B, state_dim) float32.  Returns (mean, log_std), each (B, action_dim)."""
    B, S = x.shape
    S_pad = params["s_pad"]          # multiple of 8 only (NOT 128)
    H_pad = params["h_pad"]
    A_pad = params["a_pad"]
    A = params["action_dim"]
    w_dtype = params["w1"].dtype
    w_itemsize = jnp.dtype(w_dtype).itemsize
    num_out = 2 * A_pad

    # Batch tile: multiple of the dtype's sublane pack; capped at ~half the
    # (rounded) batch so the grid has >=2 steps whenever possible (v7x TCs).
    sublane = 16 if w_dtype == jnp.bfloat16 else 8
    b_ceil = _round_up(B, sublane)
    half = _round_up(_cdiv(b_ceil, 2), sublane)
    tb = max(sublane, min(_round_up(block_b, sublane), half))
    B_pad = _round_up(B, tb)
    grid = (B_pad // tb,)

    # Pad batch to whole tiles and state_dim to a multiple of 8 (zero padding
    # is exact for linear layers); padded rows are sliced off below.
    x_p = jnp.zeros((B_pad, S_pad), w_dtype).at[:B, :S].set(x.astype(w_dtype))

    # --- cost estimate --------------------------------------------------
    flops = 2 * B_pad * (S_pad * H_pad + H_pad * H_pad + H_pad * num_out)
    bytes_accessed = (
        x_p.size * x_p.dtype.itemsize
        + sum(params[k].size * params[k].dtype.itemsize
              for k in ("w1", "b1", "w2", "b2", "wh", "bh"))
        + B_pad * num_out * 4
    )

    # --- explicit VMEM budget (resident weights single-buffered) ---------
    weight_bytes = (S_pad * H_pad + H_pad * H_pad + H_pad * num_out) * w_itemsize
    bias_bytes = (2 * H_pad + num_out) * 4
    io_bytes = 2 * tb * (S_pad * w_itemsize + num_out * 4)          # double-buffered x / out
    act_bytes = tb * (2 * H_pad * (4 + w_itemsize) + 2 * num_out * 4)  # h1/h2 f32 + cast, y
    vmem_bytes = int(1.25 * (weight_bytes + bias_bytes + io_bytes + act_bytes)) + (2 << 20)
    vmem_bytes = min(max(vmem_bytes, 4 << 20), 64 << 20)

    kernel = functools.partial(actor_kernel, a_pad=A_pad)

    # Weights / biases: constant index_map -> resident; single buffer.
    resident = functools.partial(pl.BlockSpec, pipeline_mode=pl.Buffered(1))

    out = pl.pallas_call(
        kernel,
        out_shape=jax.ShapeDtypeStruct((B_pad, num_out), jnp.float32),
        grid_spec=pltpu.PrefetchScalarGridSpec(
            num_scalar_prefetch=0,
            grid=grid,
            in_specs=[
                # x: tiled over the batch -> double-buffered DMA per grid step.
                pl.BlockSpec((tb, S_pad), lambda i: (i, 0)),
                # Weights / biases: DMA'd once, stay resident in VMEM.
                resident((S_pad, H_pad), lambda i: (0, 0)),
                resident((1, H_pad), lambda i: (0, 0)),
                resident((H_pad, H_pad), lambda i: (0, 0)),
                resident((1, H_pad), lambda i: (0, 0)),
                resident((H_pad, num_out), lambda i: (0, 0)),
                resident((1, num_out), lambda i: (0, 0)),
            ],
            out_specs=pl.BlockSpec((tb, num_out), lambda i: (i, 0)),
        ),
        compiler_params=pltpu.CompilerParams(
            dimension_semantics=("parallel",),   # shard batch across v7x's 2 TCs
            vmem_limit_bytes=vmem_bytes,
        ),
        cost_estimate=pl.CostEstimate(
            flops=flops,
            transcendentals=B_pad * A_pad,
            bytes_accessed=bytes_accessed,
        ),
    )(x_p, params["w1"], params["b1"], params["w2"], params["b2"],
      params["wh"], params["bh"])

    mean = out[:B, :A]
    log_std = out[:B, A_pad:A_pad + A]
    return mean, log_std


# ---------------------------------------------------------------------------
# Parameter init (matches torch orthogonal_ + zero bias), with hardware padding
# ---------------------------------------------------------------------------
def _orthogonal(key, out_dim, in_dim, gain):
    """Orthogonal init (torch.nn.init.orthogonal_ semantics)."""
    rows, cols = out_dim, in_dim
    flat = jax.random.normal(key, (max(rows, cols), min(rows, cols)), jnp.float32)
    q, r = jnp.linalg.qr(flat)
    q = q * jnp.sign(jnp.diag(r))
    if rows < cols:
        q = q.T
    return gain * q[:rows, :cols]


def init_actor_params(key, state_dim, hidden_size, action_dim, *,
                      param_dtype=jnp.bfloat16):
    """bfloat16 params by default (perf path); pass jnp.float32 for exact math."""
    gain = math.sqrt(2.0)
    k1, k2, k3, k4 = jax.random.split(key, 4)

    # PyTorch Linear weight is (out, in); transpose to (in, out) for y = x @ W.
    w1 = _orthogonal(k1, hidden_size, state_dim, gain).T      # (S, H)
    w2 = _orthogonal(k2, hidden_size, hidden_size, gain).T    # (H, H)
    wm = _orthogonal(k3, action_dim, hidden_size, gain).T     # (H, A)
    wl = _orthogonal(k4, action_dim, hidden_size, gain).T     # (H, A)

    # Pad: state_dim only to a sublane multiple (8); hidden / heads to 128
    # lanes (zero padding is exact for linear + ReLU layers).
    S_pad = _round_up(state_dim, 8)
    H_pad = _round_up(hidden_size, 128)
    A_pad = _round_up(action_dim, 128)

    w1p = jnp.zeros((S_pad, H_pad), jnp.float32).at[:state_dim, :hidden_size].set(w1)
    w2p = jnp.zeros((H_pad, H_pad), jnp.float32).at[:hidden_size, :hidden_size].set(w2)
    # Fused head weight: [ mean | pad | log_std | pad ] along the lane axis.
    whp = jnp.zeros((H_pad, 2 * A_pad), jnp.float32)
    whp = whp.at[:hidden_size, :action_dim].set(wm)
    whp = whp.at[:hidden_size, A_pad:A_pad + action_dim].set(wl)

    params = {
        # Weights optionally bf16 (halves weight HBM/VMEM; f32 MXU accum).
        "w1": w1p.astype(param_dtype),
        "w2": w2p.astype(param_dtype),
        "wh": whp.astype(param_dtype),
        # Biases stay f32 (added to the f32 accumulator).  All zeros per spec.
        "b1": jnp.zeros((1, H_pad), jnp.float32),
        "b2": jnp.zeros((1, H_pad), jnp.float32),
        "bh": jnp.zeros((1, 2 * A_pad), jnp.float32),
        "state_dim": state_dim, "hidden_size": hidden_size, "action_dim": action_dim,
        "s_pad": S_pad, "h_pad": H_pad, "a_pad": A_pad,
        # Unpadded f32 copies for the pure-JAX reference.
        "ref": {"w1": w1, "w2": w2, "wm": wm, "wl": wl,
                "b1": jnp.zeros((hidden_size,), jnp.float32),
                "b2": jnp.zeros((hidden_size,), jnp.float32),
                "bm": jnp.zeros((action_dim,), jnp.float32),
                "bl": jnp.zeros((action_dim,), jnp.float32)},
    }
    return params


def actor_forward_ref(x, ref_params):
    """Pure-JAX reference (unpadded weights) for correctness checking."""
    h1 = jnp.maximum(x @ ref_params["w1"] + ref_params["b1"], 0.0)
    h2 = jnp.maximum(h1 @ ref_params["w2"] + ref_params["b2"], 0.0)
    mean = h2 @ ref_params["wm"] + ref_params["bm"]
    ls = jnp.tanh(h2 @ ref_params["wl"] + ref_params["bl"])
    ls = LOG_STD_MIN + 0.5 * (LOG_STD_MAX - LOG_STD_MIN) * (ls + 1.0)
    return mean, ls


# TODO(synk): get_action's sampling / tanh-squash log-prob is host-side JAX
# (jax.random) on top of this forward kernel; not part of forward() itself.

if __name__ == "__main__":
    batch = 2
    state_dim = 16
    hidden_size = 32
    action_dim = 4

    key = jax.random.PRNGKey(0)
    kx, kp = jax.random.split(key)
    x = jax.random.normal(kx, (batch, state_dim), jnp.float32)

    # --- f32 weights: exact check against the reference --------------------
    params = init_actor_params(kp, state_dim, hidden_size, action_dim,
                               param_dtype=jnp.float32)
    mean, log_std = actor_forward(x, params)
    jax.block_until_ready((mean, log_std))

    mean_ref, log_std_ref = actor_forward_ref(x, params["ref"])
    assert mean.shape == (batch, action_dim) and log_std.shape == (batch, action_dim)
    assert jnp.allclose(mean, mean_ref, atol=1e-5, rtol=1e-5)
    assert jnp.allclose(log_std, log_std_ref, atol=1e-5, rtol=1e-5)
    assert bool(jnp.all(log_std >= LOG_STD_MIN)) and bool(jnp.all(log_std <= LOG_STD_MAX))

    # --- bf16 weights (default perf path): loose sanity check --------------
    params_bf16 = init_actor_params(kp, state_dim, hidden_size, action_dim)
    mean16, log_std16 = actor_forward(x, params_bf16)
    jax.block_until_ready((mean16, log_std16))
    assert jnp.allclose(mean16, mean_ref, atol=2e-1, rtol=1e-1)
    assert jnp.allclose(log_std16, log_std_ref, atol=2e-1, rtol=1e-1)

    print("KERNEL_OK")
</pallas_src>

<mosaic_0001>
module attributes {stable_mosaic.version = 11 : i64} {
  func.func @actor_kernel(%arg0: i32, %arg1: memref<8x16xf32, #tpu.memory_space<vmem>>, %arg2: memref<16x128xf32, #tpu.memory_space<vmem>>, %arg3: memref<1x128xf32, #tpu.memory_space<vmem>>, %arg4: memref<128x128xf32, #tpu.memory_space<vmem>>, %arg5: memref<1x128xf32, #tpu.memory_space<vmem>>, %arg6: memref<128x256xf32, #tpu.memory_space<vmem>>, %arg7: memref<1x256xf32, #tpu.memory_space<vmem>>, %arg8: memref<8x256xf32, #tpu.memory_space<vmem>>) attributes {dimension_semantics = [#tpu.dimension_semantics<parallel>], iteration_bounds = array<i64: 1>, scalar_prefetch = 0 : i64, scratch_operands = 0 : i64, tpu.core_type = #tpu.core_type<tc>, window_params = [{transform_indices = @transform_0, window_bounds = array<i64: 8, 16>}, {pipeline_mode = #tpu.pipeline_mode<synchronous>, transform_indices = @transform_1, window_bounds = array<i64: 16, 128>}, {pipeline_mode = #tpu.pipeline_mode<synchronous>, transform_indices = @transform_2, window_bounds = array<i64: 1, 128>}, {pipeline_mode = #tpu.pipeline_mode<synchronous>, transform_indices = @transform_3, window_bounds = array<i64: 128, 128>}, {pipeline_mode = #tpu.pipeline_mode<synchronous>, transform_indices = @transform_4, window_bounds = array<i64: 1, 128>}, {pipeline_mode = #tpu.pipeline_mode<synchronous>, transform_indices = @transform_5, window_bounds = array<i64: 128, 256>}, {pipeline_mode = #tpu.pipeline_mode<synchronous>, transform_indices = @transform_6, window_bounds = array<i64: 1, 256>}, {transform_indices = @transform_7, window_bounds = array<i64: 8, 256>}]} {
    %c0 = arith.constant 0 : index
    %c0_0 = arith.constant 0 : index
    %0 = vector.load %arg1[%c0, %c0_0] : memref<8x16xf32, #tpu.memory_space<vmem>>, vector<8x16xf32>
    %c0_1 = arith.constant 0 : index
    %c0_2 = arith.constant 0 : index
    %1 = vector.load %arg2[%c0_1, %c0_2] : memref<16x128xf32, #tpu.memory_space<vmem>>, vector<16x128xf32>
    %cst = arith.constant dense<0.000000e+00> : vector<8x128xf32>
    %2 = tpu.matmul %0, %1, %cst {dimension_numbers = #tpu.dot_dimension_numbers<[1], [0], [0], [1], [0, 0, 1, 1], [], []>} : vector<8x16xf32>, vector<16x128xf32>, vector<8x128xf32> -> vector<8x128xf32>
    %c0_3 = arith.constant 0 : index
    %c0_4 = arith.constant 0 : index
    %3 = vector.load %arg3[%c0_3, %c0_4] : memref<1x128xf32, #tpu.memory_space<vmem>>, vector<1x128xf32>
    %4 = vector.broadcast %3 : vector<1x128xf32> to vector<8x128xf32>
    %5 = arith.addf %2, %4 : vector<8x128xf32>
    %cst_5 = arith.constant 0.000000e+00 : f32
    %6 = vector.broadcast %cst_5 : f32 to vector<8x128xf32>
    %7 = arith.maximumf %5, %6 : vector<8x128xf32>
    %c0_6 = arith.constant 0 : index
    %c0_7 = arith.constant 0 : index
    %8 = vector.load %arg4[%c0_6, %c0_7] : memref<128x128xf32, #tpu.memory_space<vmem>>, vector<128x128xf32>
    %cst_8 = arith.constant dense<0.000000e+00> : vector<8x128xf32>
    %9 = tpu.matmul %7, %8, %cst_8 {dimension_numbers = #tpu.dot_dimension_numbers<[1], [0], [0], [1], [0, 0, 1, 1], [], []>} : vector<8x128xf32>, vector<128x128xf32>, vector<8x128xf32> -> vector<8x128xf32>
    %c0_9 = arith.constant 0 : index
    %c0_10 = arith.constant 0 : index
    %10 = vector.load %arg5[%c0_9, %c0_10] : memref<1x128xf32, #tpu.memory_space<vmem>>, vector<1x128xf32>
    %11 = vector.broadcast %10 : vector<1x128xf32> to vector<8x128xf32>
    %12 = arith.addf %9, %11 : vector<8x128xf32>
    %cst_11 = arith.constant 0.000000e+00 : f32
    %13 = vector.broadcast %cst_11 : f32 to vector<8x128xf32>
    %14 = arith.maximumf %12, %13 : vector<8x128xf32>
    %c0_12 = arith.constant 0 : index
    %c0_13 = arith.constant 0 : index
    %15 = vector.load %arg6[%c0_12, %c0_13] : memref<128x256xf32, #tpu.memory_space<vmem>>, vector<128x256xf32>
    %cst_14 = arith.constant dense<0.000000e+00> : vector<8x256xf32>
    %16 = tpu.matmul %14, %15, %cst_14 {dimension_numbers = #tpu.dot_dimension_numbers<[1], [0], [0], [1], [0, 0, 1, 1], [], []>} : vector<8x128xf32>, vector<128x256xf32>, vector<8x256xf32> -> vector<8x256xf32>
    %c0_15 = arith.constant 0 : index
    %c0_16 = arith.constant 0 : index
    %17 = vector.load %arg7[%c0_15, %c0_16] : memref<1x256xf32, #tpu.memory_space<vmem>>, vector<1x256xf32>
    %18 = vector.broadcast %17 : vector<1x256xf32> to vector<8x256xf32>
    %19 = arith.addf %16, %18 : vector<8x256xf32>
    %20 = vector.extract_strided_slice %19 {offsets = [0, 0], sizes = [8, 128], strides = [1, 1]} : vector<8x256xf32> to vector<8x128xf32>
    %c0_17 = arith.constant 0 : index
    %c0_18 = arith.constant 0 : index
    %21 = vector.load %arg8[%c0_17, %c0_18] : memref<8x256xf32, #tpu.memory_space<vmem>>, vector<8x128xf32>
    tpu.vector_store %arg8[%c0_17, %c0_18], %20 {strides = array<i32>} : memref<8x256xf32, #tpu.memory_space<vmem>>, vector<8x128xf32>,
    %22 = vector.extract_strided_slice %19 {offsets = [0, 128], sizes = [8, 128], strides = [1, 1]} : vector<8x256xf32> to vector<8x128xf32>
    %23 = math.tanh %22 : vector<8x128xf32>
    %cst_19 = arith.constant 1.000000e+00 : f32
    %24 = vector.broadcast %cst_19 : f32 to vector<8x128xf32>
    %25 = arith.addf %23, %24 : vector<8x128xf32>
    %cst_20 = arith.constant 3.500000e+00 : f32
    %26 = vector.broadcast %cst_20 : f32 to vector<8x128xf32>
    %27 = arith.mulf %26, %25 : vector<8x128xf32>
    %cst_21 = arith.constant -5.000000e+00 : f32
    %28 = vector.broadcast %cst_21 : f32 to vector<8x128xf32>
    %29 = arith.addf %28, %27 : vector<8x128xf32>
    %c0_22 = arith.constant 0 : index
    %c128 = arith.constant 128 : index
    %30 = vector.load %arg8[%c0_22, %c128] : memref<8x256xf32, #tpu.memory_space<vmem>>, vector<8x128xf32>
    tpu.vector_store %arg8[%c0_22, %c128], %29 {strides = array<i32>} : memref<8x256xf32, #tpu.memory_space<vmem>>, vector<8x128xf32>,
    return
  }
  func.func @transform_0(%arg0: i32) -> (i32, i32) {
    %c0_i32 = arith.constant 0 : i32
    %c0_i32_0 = arith.constant 0 : i32
    return %arg0, %c0_i32 : i32, i32
  }
  func.func @transform_1(%arg0: i32) -> (i32, i32) {
    %c0_i32 = arith.constant 0 : i32
    %c0_i32_0 = arith.constant 0 : i32
    %c0_i32_1 = arith.constant 0 : i32
    return %c0_i32, %c0_i32_0 : i32, i32
  }
  func.func @transform_2(%arg0: i32) -> (i32, i32) {
    %c0_i32 = arith.constant 0 : i32
    %c0_i32_0 = arith.constant 0 : i32
    %c0_i32_1 = arith.constant 0 : i32
    return %c0_i32, %c0_i32_0 : i32, i32
  }
  func.func @transform_3(%arg0: i32) -> (i32, i32) {
    %c0_i32 = arith.constant 0 : i32
    %c0_i32_0 = arith.constant 0 : i32
    %c0_i32_1 = arith.constant 0 : i32
    return %c0_i32, %c0_i32_0 : i32, i32
  }
  func.func @transform_4(%arg0: i32) -> (i32, i32) {
    %c0_i32 = arith.constant 0 : i32
    %c0_i32_0 = arith.constant 0 : i32
    %c0_i32_1 = arith.constant 0 : i32
    return %c0_i32, %c0_i32_0 : i32, i32
  }
  func.func @transform_5(%arg0: i32) -> (i32, i32) {
    %c0_i32 = arith.constant 0 : i32
    %c0_i32_0 = arith.constant 0 : i32
    %c0_i32_1 = arith.constant 0 : i32
    return %c0_i32, %c0_i32_0 : i32, i32
  }
  func.func @transform_6(%arg0: i32) -> (i32, i32) {
    %c0_i32 = arith.constant 0 : i32
    %c0_i32_0 = arith.constant 0 : i32
    %c0_i32_1 = arith.constant 0 : i32
    return %c0_i32, %c0_i32_0 : i32, i32
  }
  func.func @transform_7(%arg0: i32) -> (i32, i32) {
    %c0_i32 = arith.constant 0 : i32
    %c0_i32_0 = arith.constant 0 : i32
    return %arg0, %c0_i32 : i32, i32
  }
}

</mosaic_0001>

<bundles_post_ra>
// kernel: tpu_custom_call.1
= control target key start
LH: loop header
LB: loop body
LE: loop exit
PB: predicated region body
PF: predicated region fallthrough
CT: control target
= control target key end

     0   :  { %12 = vsyncpa [#allocation3], 0  ;;  %s518_s0 = inlined_call_operand.hbm [shape: f32[8,16], index: 0, kind: input, shape index: {}]   ;;  %s519_s1 = inlined_call_operand.hbm [shape: f32[16,128], index: 1, kind: input, shape index: {}]   ;;  %s520_s2 = inlined_call_operand.vmem [shape: f32[1,128], index: 2, kind: input, shape index: {}]   ;;  %s521_s3 = inlined_call_operand.hbm [shape: f32[128,128], index: 3, kind: input, shape index: {}]   ;;  %s522_s4 = inlined_call_operand.hbm [shape: f32[1,128], index: 4, kind: input, shape index: {}]   ;;  %s523_s5 = inlined_call_operand.hbm [shape: f32[128,256], index: 5, kind: input, shape index: {}]   ;;  %s524_s6 = inlined_call_operand.vmem [shape: f32[1,256], index: 6, kind: input, shape index: {}]   ;;  %s525_s7 = inlined_call_operand.hbm [shape: f32[8,256], index: 7, kind: output, shape index: {}]  }
   0x1   :  { %13 = vsyncpa [#allocation6], 0 }
   0x2   :  { %14 = vsyncpa [#allocation9], 0  ;;  %s31_s26 = sshll.u32 %s519_s1, 4  ;;  %s32_s26 = int_to_ptr.hbm [resolvable:$true] %s31_s26 }
   0x3   :  { %15 = vsyncpa [#allocation4], 0  ;;  %s444_s27 = smov [#allocation5]   ;;  %s60_s8 = sshll.u32 %s522_s4, 4  ;;  %s61_s8 = int_to_ptr.hbm [resolvable:$true] %s60_s8 }
   0x4   :  { %s33_s28 = sshll.u32 %s444_s27, 4  ;;  %s445_s9 = smov 128   ;;  %s34_s28 = int_to_ptr.vmem [resolvable:$true] %s33_s28 }
   0x5   :  { %s446_s10 = smov 8   ;;  %s447_s11 = smov [#allocation8]  }
   0x6   :  { %39 = dma.hbm_to_vmem [thread:$0]  %s32_s26, 256, %s34_s28, [#allocation6], %s445_s9, %s445_s9, %s446_s10  }
   0x7   :  { %s62_s12 = sshll.u32 %s447_s11, 4  ;;  %s21_s15 = sshll.u32 %s518_s0, 4  ;;  %s63_s12 = int_to_ptr.vmem [resolvable:$true] %s62_s12  ;;  %s22_s15 = int_to_ptr.hbm [resolvable:$true] %s21_s15 }
   0x8   :  { %65 = dma.hbm_to_vmem [thread:$0]  %s61_s8, 16, %s63_s12, [#allocation9]  }
   0x9   :  { %s46_s17 = sshll.u32 %s521_s3, 4  ;;  %s448_s18 = smov [#allocation2]   ;;  %s47_s17 = int_to_ptr.hbm [resolvable:$true] %s46_s17 }
   0xa   :  { %s23_s19 = sshll.u32 %s448_s18, 4  ;;  %s449_s4 = smov [#allocation7]   ;;  %s24_s19 = int_to_ptr.vmem [resolvable:$true] %s23_s19 }
   0xb   :  { %26 = dma.hbm_to_vmem [thread:$0]  %s22_s15, 128, %s24_s19, [#allocation3]  }
   0xc   :  { %s48_s20 = sshll.u32 %s449_s4, 4  ;;  %s70_s23 = sshll.u32 %s523_s5, 4  ;;  %s49_s20 = int_to_ptr.vmem [resolvable:$true] %s48_s20  ;;  %s71_s23 = int_to_ptr.hbm [resolvable:$true] %s70_s23 }
   0xd   :  { %54 = dma.hbm_to_vmem [thread:$0]  %s47_s17, 2048, %s49_s20, [#allocation6], %s445_s9, %s445_s9, %s446_s10  }
   0xe   :  { %s450_s0 = smov [#allocation10]   ;;  %s451_s25 = smov 256  }
   0xf   :  { %s72_s24 = sshll.u32 %s450_s0, 4  ;;  %s452_s26 = smov 16   ;;  %s73_s24 = int_to_ptr.vmem [resolvable:$true] %s72_s24 }
  0x10   :  { %78 = dma.hbm_to_vmem [thread:$0]  %s71_s23, 4096, %s73_s24, [#allocation9], %s451_s25, %s451_s25, %s452_s26  }
  0x11   :  { %436 = dma.done.wait [#allocation3], 128  }
  0x12   :  { %437 = vsyncadd [#allocation3], 4294967168 }
  0x13   :  { %438 = dma.done.wait [#allocation6], 2304  }
  0x14   :  { %439 = vsyncadd [#allocation6], 4294964992 }
  0x15   :  { %440 = dma.done.wait [#allocation9], 4112  }
  0x16   :  { %441 = vsyncadd [#allocation9], 4294963184  ;;  %v103_v0 = vld [vmem:[#allocation5 + $0x8] sm:$0xff]  ;;  %v102_v1 = vld [vmem:[#allocation5] sm:$0xff]  ;;  %vm108_vm0 = vcmask 130048   ;;  %s453_s28 = smov [#allocation11]  }
  0x17   :  { %126 = vmatpush.msra.mxu0 %v103_v0  ;;  %v101_v2 = vld [vmem:[#allocation2] sm:$0xff]  ;;  %v148_v3 = vld [vmem:[#allocation7 + $0x78] sm:$0xff]  ;;  %v147_v4 = vld [vmem:[#allocation7 + $0x70] sm:$0xff]  ;;  %s263_s29 = sshll.u32 %s453_s28, 4  ;;  %s265_s9 = sshll.u32 %s525_s7, 4  ;;  %s264_s29 = int_to_ptr.vmem [resolvable:$true] %s263_s29  ;;  %s266_s9 = int_to_ptr.hbm [resolvable:$true] %s265_s9 }
  0x18   :  { %153 = vmatpush.msra.mxu1 %v148_v3  ;;  %v146_v5 = vld [vmem:[#allocation7 + $0x68] sm:$0xff]  ;;  %v145_v6 = vld [vmem:[#allocation7 + $0x60] sm:$0xff]  ;;  %v144_v7 = vld [vmem:[#allocation7 + $0x58] sm:$0xff] }
  0x19   :  { %127 = vmatpush.msra.mxu0 %v102_v1  ;;  %v143_v8 = vld [vmem:[#allocation7 + $0x50] sm:$0xff]  ;;  %v142_v9 = vld [vmem:[#allocation7 + $0x48] sm:$0xff]  ;;  %v141_v10 = vld [vmem:[#allocation7 + $0x40] sm:$0xff] }
  0x1a   :  { %277 = vmatmul.msk.f32.vlgmr.msra.gmra.mxu0 %vm108_vm0, %v101_v2  ;;  %154 = vmatpush.msra.mxu1 %v147_v4  ;;  %v140_v11 = vld [vmem:[#allocation7 + $0x38] sm:$0xff]  ;;  %v139_v12 = vld [vmem:[#allocation7 + $0x30] sm:$0xff]  ;;  %v138_v13 = vld [vmem:[#allocation7 + $0x28] sm:$0xff] }
  0x1b   :  { %v137_v14 = vld [vmem:[#allocation7 + $0x20] sm:$0xff]  ;;  %v136_v15 = vld [vmem:[#allocation7 + $0x18] sm:$0xff]  ;;  %v135_v16 = vld [vmem:[#allocation7 + $0x10] sm:$0xff] }
  0x1c   :  { %155 = vmatpush.msra.mxu1 %v146_v5  ;;  %v134_v17 = vld [vmem:[#allocation7 + $0x8] sm:$0xff]  ;;  %v133_v18 = vld [vmem:[#allocation7] sm:$0xff]  ;;  %v204_v19 = vld [vmem:[#allocation10 + $0xf0] sm:$0xff] }
  0x1d   :  { %v205_v20 = vld [vmem:[#allocation10 + $0xf8] sm:$0xff]  ;;  %v202_v21 = vld [vmem:[#allocation10 + $0xe0] sm:$0xff]  ;;  %212 = vmatpush.msra.mxu2 %v204_v19  ;;  %v203_v22 = vld [vmem:[#allocation10 + $0xe8] sm:$0xff] }
  0x1e   :  { %156 = vmatpush.msra.mxu1 %v145_v6  ;;  %232 = vmatpush.msra.mxu3 %v205_v20  ;;  %v200_v23 = vld [vmem:[#allocation10 + $0xd0] sm:$0xff]  ;;  %v201_v24 = vld [vmem:[#allocation10 + $0xd8] sm:$0xff]  ;;  %v198_v25 = vld [vmem:[#allocation10 + $0xc0] sm:$0xff] }
  0x1f   :  { %213 = vmatpush.msra.mxu2 %v202_v21  ;;  %v199_v26 = vld [vmem:[#allocation10 + $0xc8] sm:$0xff]  ;;  %v196_v27 = vld [vmem:[#allocation10 + $0xb0] sm:$0xff]  ;;  %v197_v28 = vld [vmem:[#allocation10 + $0xb8] sm:$0xff] }
  0x20   :  { %157 = vmatpush.msra.mxu1 %v144_v7  ;;  %233 = vmatpush.msra.mxu3 %v203_v22  ;;  %v194_v29 = vld [vmem:[#allocation10 + $0xa0] sm:$0xff]  ;;  %v195_v30 = vld [vmem:[#allocation10 + $0xa8] sm:$0xff]  ;;  %v192_v31 = vld [vmem:[#allocation10 + $0x90] sm:$0xff] }
  0x21   :  { %214 = vmatpush.msra.mxu2 %v200_v23  ;;  %v193_v32 = vld [vmem:[#allocation10 + $0x98] sm:$0xff]  ;;  %v190_v33 = vld [vmem:[#allocation10 + $0x80] sm:$0xff]  ;;  %v191_v34 = vld [vmem:[#allocation10 + $0x88] sm:$0xff] }
  0x22   :  { %158 = vmatpush.msra.mxu1 %v143_v8  ;;  %234 = vmatpush.msra.mxu3 %v201_v24  ;;  %v188_v35 = vld [vmem:[#allocation10 + $0x70] sm:$0xff]  ;;  %v189_v36 = vld [vmem:[#allocation10 + $0x78] sm:$0xff]  ;;  %v186_v37 = vld [vmem:[#allocation10 + $0x60] sm:$0xff] }
  0x23   :  { %215 = vmatpush.msra.mxu2 %v198_v25  ;;  %v187_v38 = vld [vmem:[#allocation10 + $0x68] sm:$0xff]  ;;  %v184_v39 = vld [vmem:[#allocation10 + $0x50] sm:$0xff]  ;;  %v185_v40 = vld [vmem:[#allocation10 + $0x58] sm:$0xff] }
  0x24   :  { %159 = vmatpush.msra.mxu1 %v142_v9  ;;  %235 = vmatpush.msra.mxu3 %v199_v26  ;;  %v182_v41 = vld [vmem:[#allocation10 + $0x40] sm:$0xff]  ;;  %v183_v42 = vld [vmem:[#allocation10 + $0x48] sm:$0xff]  ;;  %v180_v43 = vld [vmem:[#allocation10 + $0x30] sm:$0xff] }
  0x25   :  { %216 = vmatpush.msra.mxu2 %v196_v27  ;;  %v181_v44 = vld [vmem:[#allocation10 + $0x38] sm:$0xff]  ;;  %v288_v45 = vld [vmem:[%s520_s2] ss:$0 sm:$0xff]  ;;  %v179_v50 = vld [vmem:[#allocation10 + $0x28] sm:$0xff] }
  0x26   :  { %160 = vmatpush.msra.mxu1 %v141_v10  ;;  %236 = vmatpush.msra.mxu3 %v197_v28  ;;  %v178_v49 = vld [vmem:[#allocation10 + $0x20] sm:$0xff]  ;;  %v176_v51 = vld [vmem:[#allocation10 + $0x10] sm:$0xff]  ;;  %v177_v52 = vld [vmem:[#allocation10 + $0x18] sm:$0xff] }
  0x27   :  { %217 = vmatpush.msra.mxu2 %v194_v29  ;;  %v174_v53 = vld [vmem:[#allocation10] sm:$0xff]  ;;  %v175_v54 = vld [vmem:[#allocation10 + $0x8] sm:$0xff]  ;;  %v289_v55 = vld [vmem:[#allocation8] ss:$0 sm:$0xff] }
  0x28   :  { %161 = vmatpush.msra.mxu1 %v140_v11  ;;  %237 = vmatpush.msra.mxu3 %v195_v30  ;;  %v206_v59 = vld [vmem:[%s524_s6] sm:$0x3] }
  0x29   :  { %218 = vmatpush.msra.mxu2 %v192_v31  ;;  %v208_v60 = vperm.slane %v206_v59, 0  ;;  %v209_v61 = vperm.slane %v206_v59, 1 }
  0x2a   :  { %162 = vmatpush.msra.mxu1 %v139_v12  ;;  %238 = vmatpush.msra.mxu3 %v193_v32 }
  0x2b   :  { %219 = vmatpush.msra.mxu2 %v190_v33 }
  0x2c   :  { %163 = vmatpush.msra.mxu1 %v138_v13  ;;  %239 = vmatpush.msra.mxu3 %v191_v34 }
  0x2d   :  { %220 = vmatpush.msra.mxu2 %v188_v35 }
  0x2e   :  { %164 = vmatpush.msra.mxu1 %v137_v14  ;;  %240 = vmatpush.msra.mxu3 %v189_v36 }
  0x2f   :  { %221 = vmatpush.msra.mxu2 %v186_v37 }
  0x30   :  { %165 = vmatpush.msra.mxu1 %v136_v15  ;;  %241 = vmatpush.msra.mxu3 %v187_v38 }
  0x31   :  { %222 = vmatpush.msra.mxu2 %v184_v39 }
  0x32   :  { %166 = vmatpush.msra.mxu1 %v135_v16  ;;  %242 = vmatpush.msra.mxu3 %v185_v40 }
  0x33   :  { %223 = vmatpush.msra.mxu2 %v182_v41 }
  0x34   :  { %167 = vmatpush.msra.mxu1 %v134_v17  ;;  %243 = vmatpush.msra.mxu3 %v183_v42 }
  0x35   :  { %224 = vmatpush.msra.mxu2 %v180_v43 }
  0x36   :  { %168 = vmatpush.msra.mxu1 %v133_v18  ;;  %244 = vmatpush.msra.mxu3 %v181_v44 }
  0x37   :  { %225 = vmatpush.msra.mxu2 %v178_v49 }
  0x38   :  { %245 = vmatpush.msra.mxu3 %v179_v50 }
  0x39   :  { %226 = vmatpush.msra.mxu2 %v176_v51 }
  0x3a   :  { %246 = vmatpush.msra.mxu3 %v177_v52 }
  0x3b   :  { %227 = vmatpush.msra.mxu2 %v174_v53 }
  0x3c   :  { %247 = vmatpush.msra.mxu3 %v175_v54 }
  0x97   :  { %v129_v46 = vpop.f32.mrf.mxu0 }
  0x98   :  { %v130_v47 = vadd.f32 %v288_v45, %v129_v46 }
  0x9a   :  { %v132_v48 = vmax.f32 %v130_v47, 0.0 }
  0x9c   :  { %169 = vmatmul.f32.vlgmr.msra.gmra.mxu1 %v132_v48 }
 0x119   :  { %v170_v56 = vpop.f32.mrf.mxu1 }
 0x11a   :  { %v171_v57 = vadd.f32 %v289_v55, %v170_v56 }
 0x11c   :  { %v173_v58 = vmax.f32 %v171_v57, 0.0 }
 0x11e   :  { %228 = vmatmul.f32.vlgmr.msra.gmra.mxu2 %v173_v58  ;;  %248 = vmatmul.f32.vlgmr.msra.gmra.mxu3 %v173_v58 }
 0x1a1   :  { %v229_v62 = vpop.f32.mrf.mxu2  ;;  %v249_v63 = vpop.f32.mrf.mxu3 }
 0x1a2   :  { %v230_v0 = vadd.f32 %v229_v62, %v208_v60  ;;  %v250_v1 = vadd.f32 %v249_v63, %v209_v61 }
 0x1a4   :  { %252 = vst [vmem:[#allocation11] sm:$0xff] %v230_v0  ;;  %290 = vtanh.f32 %v250_v1 }
 0x1aa   :  { %v291_v2 = vpop.eup %290 }
 0x1ab   :  { %v254_v3 = vadd.f32 1.0, %v291_v2 }
 0x1ad   :  { %v255_v4 = vmul.f32 3.5, %v254_v3 }
 0x1af   :  { %v256_v5 = vadd.f32 -5.0, %v255_v4 }
 0x1b1   :  { %257 = vst [vmem:[#allocation11 + $0x8] sm:$0xff] %v256_v5 }
 0x1b2   :  { %268 = dma.vmem_to_hbm [thread:$0]  %s264_s29, 256, %s266_s9, [#allocation4]  }
 0x1b3   :  { %442 = dma.done.wait [#allocation4], 256  }
 0x1b4   :  { %443 = vsyncadd [#allocation4], 4294967040 }
 0x1b5   :  { %273 = vsyncpa [#allocation3], 1 }
 0x1b6   :  { %274 = vsyncpa [#allocation6], 1 }
 0x1b7   :  { %275 = vsyncpa [#allocation9], 1 }
 0x1b8   :  { %276 = vsyncpa [#allocation4], 1 }

</bundles_post_ra>
